<compile_context>
chip_gen: v7x
topology: tpu7x:2x2x1
jax: 0.10.0
libtpu: 0.0.40
codegen_flags: <defaults>
</compile_context>

<pallas_src>
import functools

import jax
import jax.numpy as jnp
from jax.experimental import pallas as pl
from jax.experimental.pallas import tpu as pltpu


# ----------------------------------------------------------------------------
# Single-step fused chain kernel: whole layer stack resident, M tiled/parallel.
# ----------------------------------------------------------------------------
def _make_chain_kernel(n_layers: int, capture_hidden: bool, dot_dtype):
    dot_dtype = jnp.dtype(dot_dtype)
    cast_operands = dot_dtype != jnp.dtype(jnp.float32)

    def kernel(x_ref, w_ref, b_ref, o_ref, *maybe_hid):
        # x_ref : (TM, H)            input rows for this M tile
        # w_ref : (n_layers, H, H)   ALL weights, already (in, out), VMEM resident
        # b_ref : (n_layers, 1, H)   ALL biases (f32)
        # o_ref : (TM, H)            final output rows
        # maybe_hid: optional single (L, TM, H) per-ms-block hidden-state slab
        h = x_ref[...].astype(jnp.float32)
        # Static unroll over layers (n_layers is tiny and known at trace time).
        for l in range(n_layers):
            lhs = h.astype(dot_dtype) if cast_operands else h
            h = (
                jnp.dot(lhs, w_ref[l], preferred_element_type=jnp.float32)
                + b_ref[l]
            )
            if capture_hidden and 1 <= l <= n_layers - 2:
                # Hidden states are captured after each ms block; pre (l == 0)
                # and post (l == n_layers - 1) are skipped.
                maybe_hid[0][l - 1] = h.astype(maybe_hid[0].dtype)
        o_ref[...] = h.astype(o_ref.dtype)

    return kernel


def fused_chain(x2d, w_stack, b_stack, *, return_hidden_states=False, tile_m=256):
    """x2d: (M, H) f32; w_stack: (L+2, H, H) (in, out); b_stack: (L+2, 1, H) f32."""
    M, H = x2d.shape
    n_layers = w_stack.shape[0]
    L = n_layers - 2

    # One "parallel" rows axis (v7x megacore sharding); the whole layer chain
    # executes in a single grid step per row tile.
    tm = M if M <= tile_m else tile_m
    grid = (pl.cdiv(M, tm),)

    in_specs = [
        pl.BlockSpec((tm, H), lambda i: (i, 0)),              # activations
        pl.BlockSpec((n_layers, H, H), lambda i: (0, 0, 0)),  # weight stack (constant -> fetched once)
        pl.BlockSpec((n_layers, 1, H), lambda i: (0, 0, 0)),  # bias stack (constant)
    ]
    final_shape = jax.ShapeDtypeStruct((M, H), jnp.float32)
    final_spec = pl.BlockSpec((tm, H), lambda i: (i, 0))

    itemsize_w = jnp.dtype(w_stack.dtype).itemsize
    flops = 2 * M * H * H * n_layers
    bytes_accessed = (
        w_stack.size * itemsize_w
        + b_stack.size * 4
        + 2 * M * H * 4
        + (L * M * H * 4 if return_hidden_states else 0)
    )
    cost = pl.CostEstimate(
        flops=flops, transcendentals=0, bytes_accessed=bytes_accessed
    )
    params = pltpu.CompilerParams(dimension_semantics=("parallel",))

    capture = return_hidden_states and L > 0
    kernel = _make_chain_kernel(n_layers, capture, w_stack.dtype)

    if capture:
        hid_shape = jax.ShapeDtypeStruct((L, M, H), jnp.float32)
        hid_spec = pl.BlockSpec((L, tm, H), lambda i: (0, i, 0))
        out2d, hid = pl.pallas_call(
            kernel,
            out_shape=(final_shape, hid_shape),
            grid=grid,
            in_specs=in_specs,
            out_specs=(final_spec, hid_spec),
            compiler_params=params,
            cost_estimate=cost,
        )(x2d, w_stack, b_stack)
        return out2d, hid

    out2d = pl.pallas_call(
        kernel,
        out_shape=final_shape,
        grid=grid,
        in_specs=in_specs,
        out_specs=final_spec,
        compiler_params=params,
        cost_estimate=cost,
    )(x2d, w_stack, b_stack)
    if return_hidden_states:  # L == 0: no ms blocks, no hidden states to return
        return out2d, jnp.zeros((0, M, H), jnp.float32)
    return out2d


# ----------------------------------------------------------------------------
# Model_ZERO forward
# ----------------------------------------------------------------------------
def model_zero_forward(x, w_stack, b_stack, return_hidden_states=False):
    """x: (B, S, H) f32; layer order in the stacks is [pre, ms..., post]."""
    B, S, H = x.shape
    x2d = x.reshape(B * S, H)

    if return_hidden_states:
        out2d, hid = fused_chain(
            x2d, w_stack, b_stack, return_hidden_states=True
        )
        return out2d.reshape(B, S, H), hid.reshape(hid.shape[0], B, S, H)

    out2d = fused_chain(x2d, w_stack, b_stack, return_hidden_states=False)
    return out2d.reshape(B, S, H)


# ----------------------------------------------------------------------------
if __name__ == "__main__":
    B, S, H = 2, 8, 128
    NUM_BLOCKS = 4
    N_LAYERS = NUM_BLOCKS + 2  # pre + ms blocks + post

    key = jax.random.PRNGKey(0)
    k_x, k_w, k_b = jax.random.split(key, 3)
    x = jax.random.normal(k_x, (B, S, H), jnp.float32)
    # Stacked, pre-transposed (in, out) weights and biases: [pre, ms..., post].
    w_stack = (
        jax.random.normal(k_w, (N_LAYERS, H, H), jnp.float32) / jnp.sqrt(H)
    )
    b_stack = jax.random.normal(k_b, (N_LAYERS, 1, H), jnp.float32) * 0.02

    fwd = jax.jit(
        functools.partial(model_zero_forward, return_hidden_states=False)
    )
    out = fwd(x, w_stack, b_stack)
    jax.block_until_ready(out)

    fwd_h = jax.jit(
        functools.partial(model_zero_forward, return_hidden_states=True)
    )
    out2, hiddens = fwd_h(x, w_stack, b_stack)
    jax.block_until_ready((out2, hiddens))

    # Plain-JAX reference.
    def ref_forward(x, w_stack, b_stack):
        h = x.reshape(-1, H)
        hs = []
        for i in range(N_LAYERS):
            h = h @ w_stack[i] + b_stack[i]
            if 1 <= i <= N_LAYERS - 2:
                hs.append(h.reshape(B, S, H))
        return h.reshape(B, S, H), jnp.stack(hs, axis=0)

    ref_out, ref_hid = ref_forward(x, w_stack, b_stack)
    assert out.shape == (B, S, H)
    assert hiddens.shape == (NUM_BLOCKS, B, S, H)
    assert jnp.allclose(out, ref_out, atol=1e-4, rtol=1e-4)
    assert jnp.allclose(out2, ref_out, atol=1e-4, rtol=1e-4)
    assert jnp.allclose(hiddens, ref_hid, atol=1e-4, rtol=1e-4)

    # bf16-MXU path: weights stored in bf16, dot operands bf16, f32 accumulate
    # and f32 bias/carry/stores. Looser tolerance: per-layer bf16 rounding
    # accumulates over the 6-layer chain.
    w_bf16 = w_stack.astype(jnp.bfloat16)
    out_bf = jax.jit(
        functools.partial(model_zero_forward, return_hidden_states=False)
    )(x, w_bf16, b_stack)
    jax.block_until_ready(out_bf)
    assert jnp.allclose(out_bf, ref_out, atol=0.15, rtol=0.15)

    print("KERNEL_OK")
</pallas_src>

<mosaic_0001>
module attributes {stable_mosaic.version = 11 : i64} {
  func.func @kernel(%arg0: i32, %arg1: memref<16x128xf32, #tpu.memory_space<vmem>>, %arg2: memref<6x128x128xf32, #tpu.memory_space<vmem>>, %arg3: memref<6x1x128xf32, #tpu.memory_space<vmem>>, %arg4: memref<16x128xf32, #tpu.memory_space<vmem>>) attributes {dimension_semantics = [#tpu.dimension_semantics<parallel>], iteration_bounds = array<i64: 1>, scalar_prefetch = 0 : i64, scratch_operands = 0 : i64, tpu.core_type = #tpu.core_type<tc>, window_params = [{transform_indices = @transform_0, window_bounds = array<i64: 16, 128>}, {pipeline_mode = #tpu.pipeline_mode<synchronous>, transform_indices = @transform_1, window_bounds = array<i64: 6, 128, 128>}, {pipeline_mode = #tpu.pipeline_mode<synchronous>, transform_indices = @transform_2, window_bounds = array<i64: 6, 1, 128>}, {transform_indices = @transform_3, window_bounds = array<i64: 16, 128>}]} {
    %c0 = arith.constant 0 : index
    %c0_0 = arith.constant 0 : index
    %0 = vector.load %arg1[%c0, %c0_0] : memref<16x128xf32, #tpu.memory_space<vmem>>, vector<16x128xf32>
    %c0_1 = arith.constant 0 : index
    %c0_2 = arith.constant 0 : index
    %c0_3 = arith.constant 0 : index
    %1 = vector.load %arg2[%c0_1, %c0_2, %c0_3] : memref<6x128x128xf32, #tpu.memory_space<vmem>>, vector<1x128x128xf32>
    %2 = vector.shape_cast %1 : vector<1x128x128xf32> to vector<128x128xf32>
    %cst = arith.constant dense<0.000000e+00> : vector<16x128xf32>
    %3 = tpu.matmul %0, %2, %cst {dimension_numbers = #tpu.dot_dimension_numbers<[1], [0], [0], [1], [0, 0, 1, 1], [], []>} : vector<16x128xf32>, vector<128x128xf32>, vector<16x128xf32> -> vector<16x128xf32>
    %c0_4 = arith.constant 0 : index
    %c0_5 = arith.constant 0 : index
    %c0_6 = arith.constant 0 : index
    %4 = vector.load %arg3[%c0_4, %c0_5, %c0_6] : memref<6x1x128xf32, #tpu.memory_space<vmem>>, vector<1x1x128xf32>
    %5 = vector.shape_cast %4 : vector<1x1x128xf32> to vector<1x128xf32>
    %6 = vector.broadcast %5 : vector<1x128xf32> to vector<16x128xf32>
    %7 = arith.addf %3, %6 : vector<16x128xf32>
    %c1 = arith.constant 1 : index
    %c0_7 = arith.constant 0 : index
    %c0_8 = arith.constant 0 : index
    %8 = vector.load %arg2[%c1, %c0_7, %c0_8] : memref<6x128x128xf32, #tpu.memory_space<vmem>>, vector<1x128x128xf32>
    %9 = vector.shape_cast %8 : vector<1x128x128xf32> to vector<128x128xf32>
    %cst_9 = arith.constant dense<0.000000e+00> : vector<16x128xf32>
    %10 = tpu.matmul %7, %9, %cst_9 {dimension_numbers = #tpu.dot_dimension_numbers<[1], [0], [0], [1], [0, 0, 1, 1], [], []>} : vector<16x128xf32>, vector<128x128xf32>, vector<16x128xf32> -> vector<16x128xf32>
    %c1_10 = arith.constant 1 : index
    %c0_11 = arith.constant 0 : index
    %c0_12 = arith.constant 0 : index
    %11 = vector.load %arg3[%c1_10, %c0_11, %c0_12] : memref<6x1x128xf32, #tpu.memory_space<vmem>>, vector<1x1x128xf32>
    %12 = vector.shape_cast %11 : vector<1x1x128xf32> to vector<1x128xf32>
    %13 = vector.broadcast %12 : vector<1x128xf32> to vector<16x128xf32>
    %14 = arith.addf %10, %13 : vector<16x128xf32>
    %c2 = arith.constant 2 : index
    %c0_13 = arith.constant 0 : index
    %c0_14 = arith.constant 0 : index
    %15 = vector.load %arg2[%c2, %c0_13, %c0_14] : memref<6x128x128xf32, #tpu.memory_space<vmem>>, vector<1x128x128xf32>
    %16 = vector.shape_cast %15 : vector<1x128x128xf32> to vector<128x128xf32>
    %cst_15 = arith.constant dense<0.000000e+00> : vector<16x128xf32>
    %17 = tpu.matmul %14, %16, %cst_15 {dimension_numbers = #tpu.dot_dimension_numbers<[1], [0], [0], [1], [0, 0, 1, 1], [], []>} : vector<16x128xf32>, vector<128x128xf32>, vector<16x128xf32> -> vector<16x128xf32>
    %c2_16 = arith.constant 2 : index
    %c0_17 = arith.constant 0 : index
    %c0_18 = arith.constant 0 : index
    %18 = vector.load %arg3[%c2_16, %c0_17, %c0_18] : memref<6x1x128xf32, #tpu.memory_space<vmem>>, vector<1x1x128xf32>
    %19 = vector.shape_cast %18 : vector<1x1x128xf32> to vector<1x128xf32>
    %20 = vector.broadcast %19 : vector<1x128xf32> to vector<16x128xf32>
    %21 = arith.addf %17, %20 : vector<16x128xf32>
    %c3 = arith.constant 3 : index
    %c0_19 = arith.constant 0 : index
    %c0_20 = arith.constant 0 : index
    %22 = vector.load %arg2[%c3, %c0_19, %c0_20] : memref<6x128x128xf32, #tpu.memory_space<vmem>>, vector<1x128x128xf32>
    %23 = vector.shape_cast %22 : vector<1x128x128xf32> to vector<128x128xf32>
    %cst_21 = arith.constant dense<0.000000e+00> : vector<16x128xf32>
    %24 = tpu.matmul %21, %23, %cst_21 {dimension_numbers = #tpu.dot_dimension_numbers<[1], [0], [0], [1], [0, 0, 1, 1], [], []>} : vector<16x128xf32>, vector<128x128xf32>, vector<16x128xf32> -> vector<16x128xf32>
    %c3_22 = arith.constant 3 : index
    %c0_23 = arith.constant 0 : index
    %c0_24 = arith.constant 0 : index
    %25 = vector.load %arg3[%c3_22, %c0_23, %c0_24] : memref<6x1x128xf32, #tpu.memory_space<vmem>>, vector<1x1x128xf32>
    %26 = vector.shape_cast %25 : vector<1x1x128xf32> to vector<1x128xf32>
    %27 = vector.broadcast %26 : vector<1x128xf32> to vector<16x128xf32>
    %28 = arith.addf %24, %27 : vector<16x128xf32>
    %c4 = arith.constant 4 : index
    %c0_25 = arith.constant 0 : index
    %c0_26 = arith.constant 0 : index
    %29 = vector.load %arg2[%c4, %c0_25, %c0_26] : memref<6x128x128xf32, #tpu.memory_space<vmem>>, vector<1x128x128xf32>
    %30 = vector.shape_cast %29 : vector<1x128x128xf32> to vector<128x128xf32>
    %cst_27 = arith.constant dense<0.000000e+00> : vector<16x128xf32>
    %31 = tpu.matmul %28, %30, %cst_27 {dimension_numbers = #tpu.dot_dimension_numbers<[1], [0], [0], [1], [0, 0, 1, 1], [], []>} : vector<16x128xf32>, vector<128x128xf32>, vector<16x128xf32> -> vector<16x128xf32>
    %c4_28 = arith.constant 4 : index
    %c0_29 = arith.constant 0 : index
    %c0_30 = arith.constant 0 : index
    %32 = vector.load %arg3[%c4_28, %c0_29, %c0_30] : memref<6x1x128xf32, #tpu.memory_space<vmem>>, vector<1x1x128xf32>
    %33 = vector.shape_cast %32 : vector<1x1x128xf32> to vector<1x128xf32>
    %34 = vector.broadcast %33 : vector<1x128xf32> to vector<16x128xf32>
    %35 = arith.addf %31, %34 : vector<16x128xf32>
    %c5 = arith.constant 5 : index
    %c0_31 = arith.constant 0 : index
    %c0_32 = arith.constant 0 : index
    %36 = vector.load %arg2[%c5, %c0_31, %c0_32] : memref<6x128x128xf32, #tpu.memory_space<vmem>>, vector<1x128x128xf32>
    %37 = vector.shape_cast %36 : vector<1x128x128xf32> to vector<128x128xf32>
    %cst_33 = arith.constant dense<0.000000e+00> : vector<16x128xf32>
    %38 = tpu.matmul %35, %37, %cst_33 {dimension_numbers = #tpu.dot_dimension_numbers<[1], [0], [0], [1], [0, 0, 1, 1], [], []>} : vector<16x128xf32>, vector<128x128xf32>, vector<16x128xf32> -> vector<16x128xf32>
    %c5_34 = arith.constant 5 : index
    %c0_35 = arith.constant 0 : index
    %c0_36 = arith.constant 0 : index
    %39 = vector.load %arg3[%c5_34, %c0_35, %c0_36] : memref<6x1x128xf32, #tpu.memory_space<vmem>>, vector<1x1x128xf32>
    %40 = vector.shape_cast %39 : vector<1x1x128xf32> to vector<1x128xf32>
    %41 = vector.broadcast %40 : vector<1x128xf32> to vector<16x128xf32>
    %42 = arith.addf %38, %41 : vector<16x128xf32>
    %c0_37 = arith.constant 0 : index
    %c0_38 = arith.constant 0 : index
    %43 = vector.load %arg4[%c0_37, %c0_38] : memref<16x128xf32, #tpu.memory_space<vmem>>, vector<16x128xf32>
    tpu.vector_store %arg4[%c0_37, %c0_38], %42 {strides = array<i32>} : memref<16x128xf32, #tpu.memory_space<vmem>>, vector<16x128xf32>,
    return
  }
  func.func @transform_0(%arg0: i32) -> (i32, i32) {
    %c0_i32 = arith.constant 0 : i32
    %c0_i32_0 = arith.constant 0 : i32
    return %arg0, %c0_i32 : i32, i32
  }
  func.func @transform_1(%arg0: i32) -> (i32, i32, i32) {
    %c0_i32 = arith.constant 0 : i32
    %c0_i32_0 = arith.constant 0 : i32
    %c0_i32_1 = arith.constant 0 : i32
    %c0_i32_2 = arith.constant 0 : i32
    return %c0_i32, %c0_i32_0, %c0_i32_1 : i32, i32, i32
  }
  func.func @transform_2(%arg0: i32) -> (i32, i32, i32) {
    %c0_i32 = arith.constant 0 : i32
    %c0_i32_0 = arith.constant 0 : i32
    %c0_i32_1 = arith.constant 0 : i32
    %c0_i32_2 = arith.constant 0 : i32
    return %c0_i32, %c0_i32_0, %c0_i32_1 : i32, i32, i32
  }
  func.func @transform_3(%arg0: i32) -> (i32, i32) {
    %c0_i32 = arith.constant 0 : i32
    %c0_i32_0 = arith.constant 0 : i32
    return %arg0, %c0_i32 : i32, i32
  }
}

</mosaic_0001>

<bundles_post_ra>
// kernel: model_zero_forward.1
= control target key start
LH: loop header
LB: loop body
LE: loop exit
PB: predicated region body
PF: predicated region fallthrough
CT: control target
= control target key end

     0   :  { %8 = vsyncpa [#allocation3], 0  ;;  %s1349_s0 = inlined_call_operand.hbm [shape: f32[16,128], index: 0, kind: input, shape index: {}]   ;;  %s1350_s1 = inlined_call_operand.hbm [shape: f32[6,128,128], index: 1, kind: input, shape index: {}]   ;;  %s1351_s2 = inlined_call_operand.vmem [shape: f32[6,1,128], index: 2, kind: input, shape index: {}]   ;;  %s1352_s3 = inlined_call_operand.hbm [shape: f32[16,128], index: 3, kind: output, shape index: {}]  }
   0x1   :  { %9 = vsyncpa [#allocation6], 0 }
   0x2   :  { %10 = vsyncpa [#allocation4], 0  ;;  %s1261_s12 = smov [#allocation2]   ;;  %s1189_s16 = scalar_lea.hbm %s1349_s0, 256 }
   0x3   :  { %s16_s13 = sshll.u32 %s1261_s12, 4  ;;  %p1190_p0 = scmp.ne.s32.totalorder %s1349_s0, %s1189_s16  ;;  %s17_s13 = int_to_ptr.vmem [resolvable:$true] %s16_s13 }
   0x4   :  { %p1193_p1 = scmp.lt.u32.totalorder %s1189_s16, %s1349_s0 }
   0x6   :  { %p1195_p2 = pnand %p1193_p1, %p1190_p0 }
   0x8   :  { %1198 = shalt.err (!%p1195_p2)
}
   0x9   :  { %s1199_s21 = scalar_lea.vmem %s17_s13, 256  ;;  %p1204_p4 = scmp.lt.s32.totalorder %s17_s13, %s17_s13 }
   0xa   :  { %p1200_p3 = scmp.ne.s32.totalorder %s17_s13, %s1199_s21  ;;  %p1205_p5 = scmp.lt.s32.totalorder %s1199_s21, %s1199_s21 }
   0xc   :  { %p1206_p6 = por %p1205_p5, %p1204_p4 }
   0xe   :  { %p1207_p7 = pnand %p1206_p6, %p1200_p3 }
  0x10   :  { %1210 = shalt.err (!%p1207_p7)
}
  0x11   :  { %s1262_s22 = smov 128   ;;  %s1263_s23 = smov 8  }
  0x12   :  { %22 = dma.hbm_to_vmem [thread:$0]  %s1349_s0, 256, %s17_s13, [#allocation3], %s1262_s22, %s1262_s22, %s1263_s23  }
  0x13   :  { %s1264_s26 = smov [#allocation5]   ;;  %s1211_s30 = scalar_lea.hbm %s1350_s1, 12288 }
  0x14   :  { %s28_s27 = sshll.u32 %s1264_s26, 4  ;;  %p1212_p8 = scmp.ne.s32.totalorder %s1350_s1, %s1211_s30  ;;  %s29_s27 = int_to_ptr.vmem [resolvable:$true] %s28_s27 }
  0x15   :  { %p1215_p9 = scmp.lt.u32.totalorder %s1211_s30, %s1350_s1 }
  0x17   :  { %p1217_p10 = pnand %p1215_p9, %p1212_p8 }
  0x19   :  { %1220 = shalt.err (!%p1217_p10)
}
  0x1a   :  { %s1221_s8 = scalar_lea.vmem %s29_s27, 12288  ;;  %p1226_p12 = scmp.lt.s32.totalorder %s29_s27, %s29_s27 }
  0x1b   :  { %p1222_p11 = scmp.ne.s32.totalorder %s29_s27, %s1221_s8  ;;  %p1227_p13 = scmp.lt.s32.totalorder %s1221_s8, %s1221_s8 }
  0x1d   :  { %p1228_p0 = por %p1227_p13, %p1226_p12 }
  0x1f   :  { %p1229_p1 = pnand %p1228_p0, %p1222_p11 }
  0x21   :  { %1232 = shalt.err (!%p1229_p1)
}
  0x22   :  { %34 = dma.hbm_to_vmem [thread:$0]  %s1350_s1, 12288, %s29_s27, [#allocation6], %s1262_s22, %s1262_s22, %s1263_s23  }
  0x23   :  { %1255 = dma.done.wait [#allocation3], 256  }
  0x24   :  { %1256 = vsyncadd [#allocation3], 4294967040 }
  0x25   :  { %1257 = dma.done.wait [#allocation6], 12288  }
  0x26   :  { %1258 = vsyncadd [#allocation6], 4294955008  ;;  %v45_v0 = vld [vmem:[#allocation5] sm:$0xff]  ;;  %v46_v1 = vld [vmem:[#allocation5 + $0x8] sm:$0xff]  ;;  %s1265_s21 = smov [#allocation7]  }
  0x27   :  { %v47_v2 = vld [vmem:[#allocation5 + $0x10] sm:$0xff]  ;;  %v992_v3 = vpack.c.bf16 %v46_v1, %v45_v0  ;;  %v48_v4 = vld [vmem:[#allocation5 + $0x18] sm:$0xff]  ;;  %v49_v6 = vld [vmem:[#allocation5 + $0x20] sm:$0xff]  ;;  %s650_s24 = sshll.u32 %s1265_s21, 4  ;;  %s651_s24 = int_to_ptr.vmem [resolvable:$true] %s650_s24 }
  0x28   :  { %v996_v5 = vpack.c.bf16 %v48_v4, %v47_v2  ;;  %v50_v7 = vld [vmem:[#allocation5 + $0x28] sm:$0xff]  ;;  %v51_v9 = vld [vmem:[#allocation5 + $0x30] sm:$0xff]  ;;  %v52_v10 = vld [vmem:[#allocation5 + $0x38] sm:$0xff]  ;;  %s1233_s25 = scalar_lea.vmem %s651_s24, 256  ;;  %p1238_p3 = scmp.lt.s32.totalorder %s651_s24, %s651_s24 }
  0x29   :  { %993 = vmatprep.subr.bf16.mxu0 %v992_v3  ;;  %v1000_v8 = vpack.c.bf16 %v50_v7, %v49_v6  ;;  %v43_v11 = vld [vmem:[#allocation2] sm:$0xff]  ;;  %v144_v12 = vld [vmem:[#allocation5 + $0x80] sm:$0xff]  ;;  %v145_v13 = vld [vmem:[#allocation5 + $0x88] sm:$0xff]  ;;  %v1004_v20 = vpack.c.bf16 %v52_v10, %v51_v9  ;;  %p1234_p2 = scmp.ne.s32.totalorder %s651_s24, %s1233_s25  ;;  %p1239_p4 = scmp.lt.s32.totalorder %s1233_s25, %s1233_s25 }
  0x2a   :  { %995 = vmatpush3.bf16.msra.mxu0 %v992_v3  ;;  %814 = vmatprep.mubr.f32.mxu0 %v43_v11  ;;  %v146_v14 = vld [vmem:[#allocation5 + $0x90] sm:$0xff]  ;;  %v1024_v15 = vpack.c.bf16 %v145_v13, %v144_v12  ;;  %v147_v16 = vld [vmem:[#allocation5 + $0x98] sm:$0xff]  ;;  %v148_v18 = vld [vmem:[#allocation5 + $0xa0] sm:$0xff] }
  0x2b   :  { %997 = vmatprep.subr.bf16.mxu0 %v996_v5  ;;  %v1028_v17 = vpack.c.bf16 %v147_v16, %v146_v14  ;;  %v149_v19 = vld [vmem:[#allocation5 + $0xa8] sm:$0xff]  ;;  %v53_v21 = vld [vmem:[#allocation5 + $0x40] sm:$0xff]  ;;  %v150_v24 = vld [vmem:[#allocation5 + $0xb0] sm:$0xff]  ;;  %p1240_p5 = por %p1239_p4, %p1238_p3 }
  0x2c   :  { %1025 = vmatprep.subr.bf16.mxu1 %v1024_v15  ;;  %v54_v22 = vld [vmem:[#allocation5 + $0x48] sm:$0xff]  ;;  %v1032_v23 = vpack.c.bf16 %v149_v19, %v148_v18  ;;  %v151_v25 = vld [vmem:[#allocation5 + $0xb8] sm:$0xff]  ;;  %v55_v27 = vld [vmem:[#allocation5 + $0x50] sm:$0xff] }
  0x2d   :  { %1027 = vmatpush3.bf16.msra.mxu1 %v1024_v15  ;;  %v1008_v26 = vpack.c.bf16 %v54_v22, %v53_v21  ;;  %v56_v28 = vld [vmem:[#allocation5 + $0x58] sm:$0xff]  ;;  %v1036_v29 = vpack.c.bf16 %v151_v25, %v150_v24  ;;  %v152_v30 = vld [vmem:[#allocation5 + $0xc0] sm:$0xff]  ;;  %v153_v31 = vld [vmem:[#allocation5 + $0xc8] sm:$0xff]  ;;  %p1241_p6 = pnand %p1240_p5, %p1234_p2 }
  0x2e   :  { %999 = vmatpush3.bf16.msra.mxu0 %v996_v5  ;;  %1029 = vmatprep.subr.bf16.mxu1 %v1028_v17  ;;  %v1012_v32 = vpack.c.bf16 %v56_v28, %v55_v27  ;;  %v57_v33 = vld [vmem:[#allocation5 + $0x60] sm:$0xff]  ;;  %v58_v34 = vld [vmem:[#allocation5 + $0x68] sm:$0xff]  ;;  %v1040_v35 = vpack.c.bf16 %v153_v31, %v152_v30  ;;  %v154_v36 = vld [vmem:[#allocation5 + $0xd0] sm:$0xff] }
  0x2f   :  { %1001 = vmatprep.subr.bf16.mxu0 %v1000_v8  ;;  %v155_v37 = vld [vmem:[#allocation5 + $0xd8] sm:$0xff]  ;;  %v1016_v38 = vpack.c.bf16 %v58_v34, %v57_v33  ;;  %v59_v39 = vld [vmem:[#allocation5 + $0x70] sm:$0xff]  ;;  %v156_v42 = vld [vmem:[#allocation5 + $0xe0] sm:$0xff] }
  0x30   :  { %v60_v40 = vld [vmem:[#allocation5 + $0x78] sm:$0xff]  ;;  %v1044_v41 = vpack.c.bf16 %v155_v37, %v154_v36  ;;  %v157_v43 = vld [vmem:[#allocation5 + $0xe8] sm:$0xff]  ;;  %v158_v47 = vld [vmem:[#allocation5 + $0xf0] sm:$0xff] }
  0x31   :  { %1031 = vmatpush3.bf16.msra.mxu1 %v1028_v17  ;;  %v1020_v44 = vpack.c.bf16 %v60_v40, %v59_v39  ;;  %v1048_v45 = vpack.c.bf16 %v157_v43, %v156_v42  ;;  %v44_v46 = vld [vmem:[#allocation2 + $0x8] sm:$0xff]  ;;  %v244_v50 = vld [vmem:[#allocation5 + $0x100] sm:$0xff]  ;;  %v245_v51 = vld [vmem:[#allocation5 + $0x108] sm:$0xff] }
  0x32   :  { %1003 = vmatpush3.bf16.msra.mxu0 %v1000_v8  ;;  %1033 = vmatprep.subr.bf16.mxu1 %v1032_v23  ;;  %v159_v48 = vld [vmem:[#allocation5 + $0xf8] sm:$0xff]  ;;  %v246_v52 = vld [vmem:[#allocation5 + $0x110] sm:$0xff]  ;;  %v1056_v53 = vpack.c.bf16 %v245_v51, %v244_v50  ;;  %v248_v56 = vld [vmem:[#allocation5 + $0x120] sm:$0xff] }
  0x33   :  { %1005 = vmatprep.subr.bf16.mxu0 %v1004_v20  ;;  %v1052_v49 = vpack.c.bf16 %v159_v48, %v158_v47  ;;  %v247_v54 = vld [vmem:[#allocation5 + $0x118] sm:$0xff]  ;;  %v249_v57 = vld [vmem:[#allocation5 + $0x128] sm:$0xff]  ;;  %v250_v59 = vld [vmem:[#allocation5 + $0x130] sm:$0xff] }
  0x34   :  { %v1060_v55 = vpack.c.bf16 %v247_v54, %v246_v52  ;;  %v1064_v58 = vpack.c.bf16 %v249_v57, %v248_v56  ;;  %v251_v60 = vld [vmem:[#allocation5 + $0x138] sm:$0xff]  ;;  %v252_v62 = vld [vmem:[#allocation5 + $0x140] sm:$0xff]  ;;  %v253_v63 = vld [vmem:[#allocation5 + $0x148] sm:$0xff] }
  0x35   :  { %1035 = vmatpush3.bf16.msra.mxu1 %v1032_v23  ;;  %v1068_v61 = vpack.c.bf16 %v251_v60, %v250_v59  ;;  %v1072_v0 = vpack.c.bf16 %v253_v63, %v252_v62  ;;  %v254_v1 = vld [vmem:[#allocation5 + $0x150] sm:$0xff]  ;;  %v255_v2 = vld [vmem:[#allocation5 + $0x158] sm:$0xff]  ;;  %v256_v4 = vld [vmem:[#allocation5 + $0x160] sm:$0xff] }
  0x36   :  { %1007 = vmatpush3.bf16.msra.mxu0 %v1004_v20  ;;  %1037 = vmatprep.subr.bf16.mxu1 %v1036_v29  ;;  %v1076_v3 = vpack.c.bf16 %v255_v2, %v254_v1  ;;  %v257_v5 = vld [vmem:[#allocation5 + $0x168] sm:$0xff]  ;;  %v663_v7 = vld [vmem:[%s1351_s2] ss:$0 sm:$0xff]  ;;  %v259_v13 = vld [vmem:[#allocation5 + $0x178] sm:$0xff] }
  0x37   :  { %1009 = vmatprep.subr.bf16.mxu0 %v1008_v26  ;;  %v1080_v6 = vpack.c.bf16 %v257_v5, %v256_v4  ;;  %v258_v12 = vld [vmem:[#allocation5 + $0x170] sm:$0xff]  ;;  %v344_v15 = vld [vmem:[#allocation5 + $0x180] sm:$0xff]  ;;  %v345_v16 = vld [vmem:[#allocation5 + $0x188] sm:$0xff] }
  0x38   :  { %v1084_v14 = vpack.c.bf16 %v259_v13, %v258_v12  ;;  %v346_v17 = vld [vmem:[#allocation5 + $0x190] sm:$0xff]  ;;  %v1088_v18 = vpack.c.bf16 %v345_v16, %v344_v15  ;;  %v347_v19 = vld [vmem:[#allocation5 + $0x198] sm:$0xff]  ;;  %v348_v21 = vld [vmem:[#allocation5 + $0x1a0] sm:$0xff] }
  0x39   :  { %1039 = vmatpush3.bf16.msra.mxu1 %v1036_v29  ;;  %v1092_v20 = vpack.c.bf16 %v347_v19, %v346_v17  ;;  %v349_v22 = vld [vmem:[#allocation5 + $0x1a8] sm:$0xff]  ;;  %v350_v24 = vld [vmem:[#allocation5 + $0x1b0] sm:$0xff]  ;;  %v351_v25 = vld [vmem:[#allocation5 + $0x1b8] sm:$0xff] }
  0x3a   :  { %1011 = vmatpush3.bf16.msra.mxu0 %v1008_v26  ;;  %1041 = vmatprep.subr.bf16.mxu1 %v1040_v35  ;;  %v1096_v23 = vpack.c.bf16 %v349_v22, %v348_v21  ;;  %v1100_v26 = vpack.c.bf16 %v351_v25, %v350_v24  ;;  %v352_v27 = vld [vmem:[#allocation5 + $0x1c0] sm:$0xff]  ;;  %v353_v28 = vld [vmem:[#allocation5 + $0x1c8] sm:$0xff]  ;;  %v354_v30 = vld [vmem:[#allocation5 + $0x1d0] sm:$0xff] }
  0x3b   :  { %1013 = vmatprep.subr.bf16.mxu0 %v1012_v32  ;;  %v1104_v29 = vpack.c.bf16 %v353_v28, %v352_v27  ;;  %v355_v31 = vld [vmem:[#allocation5 + $0x1d8] sm:$0xff]  ;;  %v356_v33 = vld [vmem:[#allocation5 + $0x1e0] sm:$0xff]  ;;  %v357_v34 = vld [vmem:[#allocation5 + $0x1e8] sm:$0xff] }
  0x3c   :  { %v665_v36 = vld [vmem:[%s1351_s2 + $0x1] ss:$0 sm:$0xff]  ;;  %v359_v42 = vld [vmem:[#allocation5 + $0x1f8] sm:$0xff]  ;;  %v448_v50 = vld [vmem:[#allocation5 + $0x220] sm:$0xff] }
  0x3d   :  { %1043 = vmatpush3.bf16.msra.mxu1 %v1040_v35  ;;  %v1112_v35 = vpack.c.bf16 %v357_v34, %v356_v33  ;;  %v447_v48 = vld [vmem:[#allocation5 + $0x218] sm:$0xff]  ;;  %v449_v51 = vld [vmem:[#allocation5 + $0x228] sm:$0xff]  ;;  %v452_v56 = vld [vmem:[#allocation5 + $0x240] sm:$0xff] }
  0x3e   :  { %1015 = vmatpush3.bf16.msra.mxu0 %v1012_v32  ;;  %1045 = vmatprep.subr.bf16.mxu1 %v1044_v41  ;;  %v1108_v32 = vpack.c.bf16 %v355_v31, %v354_v30  ;;  %v1128_v52 = vpack.c.bf16 %v449_v51, %v448_v50  ;;  %v451_v54 = vld [vmem:[#allocation5 + $0x238] sm:$0xff]  ;;  %v453_v57 = vld [vmem:[#allocation5 + $0x248] sm:$0xff]  ;;  %v454_v59 = vld [vmem:[#allocation5 + $0x250] sm:$0xff] }
  0x3f   :  { %1017 = vmatprep.subr.bf16.mxu0 %v1016_v38  ;;  %v455_v60 = vld [vmem:[#allocation5 + $0x258] sm:$0xff]  ;;  %v456_v62 = vld [vmem:[#allocation5 + $0x260] sm:$0xff]  ;;  %v457_v63 = vld [vmem:[#allocation5 + $0x268] sm:$0xff] }
  0x40   :  { %v667_v1 = vld [vmem:[%s1351_s2 + $0x2] ss:$0 sm:$0xff]  ;;  %v547_v13 = vld [vmem:[#allocation5 + $0x298] sm:$0xff]  ;;  %v548_v15 = vld [vmem:[#allocation5 + $0x2a0] sm:$0xff] }
  0x41   :  { %1047 = vmatpush3.bf16.msra.mxu1 %v1044_v41  ;;  %v358_v41 = vld [vmem:[#allocation5 + $0x1f0] sm:$0xff]  ;;  %v549_v16 = vld [vmem:[#allocation5 + $0x2a8] sm:$0xff]  ;;  %v551_v19 = vld [vmem:[#allocation5 + $0x2b8] sm:$0xff] }
  0x42   :  { %1019 = vmatpush3.bf16.msra.mxu0 %v1016_v38  ;;  %1049 = vmatprep.subr.bf16.mxu1 %v1048_v45  ;;  %v1116_v43 = vpack.c.bf16 %v359_v42, %v358_v41  ;;  %v1160_v17 = vpack.c.bf16 %v549_v16, %v548_v15  ;;  %v552_v21 = vld [vmem:[#allocation5 + $0x2c0] sm:$0xff]  ;;  %v553_v22 = vld [vmem:[#allocation5 + $0x2c8] sm:$0xff]  ;;  %v554_v24 = vld [vmem:[#allocation5 + $0x2d0] sm:$0xff] }
  0x43   :  { %1021 = vmatprep.subr.bf16.mxu0 %v1020_v44  ;;  %v555_v25 = vld [vmem:[#allocation5 + $0x2d8] sm:$0xff]  ;;  %v556_v27 = vld [vmem:[#allocation5 + $0x2e0] sm:$0xff]  ;;  %v557_v28 = vld [vmem:[#allocation5 + $0x2e8] sm:$0xff] }
  0x44   :  { %v669_v30 = vld [vmem:[%s1351_s2 + $0x3] ss:$0 sm:$0xff] }
  0x45   :  { %1051 = vmatpush3.bf16.msra.mxu1 %v1048_v45  ;;  %v445_v45 = vld [vmem:[#allocation5 + $0x208] sm:$0xff] }
  0x46   :  { %1023 = vmatpush3.bf16.msra.mxu0 %v1020_v44  ;;  %1053 = vmatprep.subr.bf16.mxu1 %v1052_v49  ;;  %v444_v44 = vld [vmem:[#allocation5 + $0x200] sm:$0xff] }
  0x47   :  { %1057 = vmatprep.subr.bf16.mxu0 %v1056_v53  ;;  %v1120_v47 = vpack.c.bf16 %v445_v45, %v444_v44 }
  0x49   :  { %815 = vmatmul.mubr.f32.vlgmr.msra.gmra.mrb[0].mxu0 %v44_v46  ;;  %1055 = vmatpush3.bf16.msra.mxu1 %v1052_v49  ;;  %v446_v46 = vld [vmem:[#allocation5 + $0x210] sm:$0xff] }
  0x4a   :  { %1059 = vmatpush3.bf16.msra.mxu0 %v1056_v53  ;;  %1089 = vmatprep.subr.bf16.mxu1 %v1088_v18  ;;  %v1124_v49 = vpack.c.bf16 %v447_v48, %v446_v46  ;;  %v450_v53 = vld [vmem:[#allocation5 + $0x230] sm:$0xff] }
  0x4b   :  { %1061 = vmatprep.subr.bf16.mxu0 %v1060_v55 }
  0x4e   :  { %1063 = vmatpush3.bf16.msra.mxu0 %v1060_v55  ;;  %v1132_v55 = vpack.c.bf16 %v451_v54, %v450_v53 }
  0x4f   :  { %1065 = vmatprep.subr.bf16.mxu0 %v1064_v58 }
  0x52   :  { %1067 = vmatpush3.bf16.msra.mxu0 %v1064_v58  ;;  %v1136_v58 = vpack.c.bf16 %v453_v57, %v452_v56 }
  0x53   :  { %1069 = vmatprep.subr.bf16.mxu0 %v1068_v61 }
  0x56   :  { %1071 = vmatpush3.bf16.msra.mxu0 %v1068_v61  ;;  %v1140_v61 = vpack.c.bf16 %v455_v60, %v454_v59 }
  0x57   :  { %1073 = vmatprep.subr.bf16.mxu0 %v1072_v0 }
  0x5a   :  { %1075 = vmatpush3.bf16.msra.mxu0 %v1072_v0  ;;  %v1144_v0 = vpack.c.bf16 %v457_v63, %v456_v62 }
  0x5b   :  { %1077 = vmatprep.subr.bf16.mxu0 %v1076_v3 }
  0x5e   :  { %1079 = vmatpush3.bf16.msra.mxu0 %v1076_v3 }
  0x5f   :  { %1081 = vmatprep.subr.bf16.mxu0 %v1080_v6 }
  0x62   :  { %1083 = vmatpush3.bf16.msra.mxu0 %v1080_v6  ;;  %v458_v6 = vld [vmem:[#allocation5 + $0x270] sm:$0xff] }
  0x63   :  { %1085 = vmatprep.subr.bf16.mxu0 %v1084_v14 }
  0x66   :  { %1087 = vmatpush3.bf16.msra.mxu0 %v1084_v14 }
  0x67   :  { %1121 = vmatprep.subr.bf16.mxu0 %v1120_v47 }
 0x11c   :  { %v816_v8 = vpop.f32.mrb[0].mxu0 }
 0x11d   :  { %v134_v9 = vpop.f32.mrb[1].mxu0  ;;  %v140_v11 = vadd.f32 %v816_v8, %v663_v7 }
 0x11e   :  { %v135_v10 = vadd.f32 %v663_v7, %v134_v9  ;;  %v459_v7 = vld [vmem:[#allocation5 + $0x278] sm:$0xff]  ;;  %v544_v9 = vld [vmem:[#allocation5 + $0x280] sm:$0xff] }
 0x11f   :  { %v1148_v8 = vpack.c.bf16 %v459_v7, %v458_v6 }
 0x120   :  { %849 = vmatprep.mubr.f32.mxu1 %v135_v10  ;;  %v545_v10 = vld [vmem:[#allocation5 + $0x288] sm:$0xff] }
 0x121   :  { %850 = vmatmul.mubr.f32.vlgmr.msra.gmra.mrb[0].mxu1 %v140_v11  ;;  %v546_v11 = vld [vmem:[#allocation5 + $0x290] sm:$0xff]  ;;  %v1152_v12 = vpack.c.bf16 %v545_v10, %v544_v9 }
 0x122   :  { %1091 = vmatpush3.bf16.msra.mxu1 %v1088_v18  ;;  %v1156_v14 = vpack.c.bf16 %v547_v13, %v546_v11  ;;  %v550_v18 = vld [vmem:[#allocation5 + $0x2b0] sm:$0xff] }
 0x123   :  { %1093 = vmatprep.subr.bf16.mxu1 %v1092_v20 }
 0x126   :  { %1095 = vmatpush3.bf16.msra.mxu1 %v1092_v20  ;;  %v1164_v20 = vpack.c.bf16 %v551_v19, %v550_v18 }
 0x127   :  { %1097 = vmatprep.subr.bf16.mxu1 %v1096_v23 }
 0x12a   :  { %1099 = vmatpush3.bf16.msra.mxu1 %v1096_v23  ;;  %v1168_v23 = vpack.c.bf16 %v553_v22, %v552_v21 }
 0x12b   :  { %1101 = vmatprep.subr.bf16.mxu1 %v1100_v26 }
 0x12e   :  { %1103 = vmatpush3.bf16.msra.mxu1 %v1100_v26  ;;  %v1172_v26 = vpack.c.bf16 %v555_v25, %v554_v24 }
 0x12f   :  { %1105 = vmatprep.subr.bf16.mxu1 %v1104_v29 }
 0x132   :  { %1107 = vmatpush3.bf16.msra.mxu1 %v1104_v29  ;;  %v1176_v29 = vpack.c.bf16 %v557_v28, %v556_v27 }
 0x133   :  { %1109 = vmatprep.subr.bf16.mxu1 %v1108_v32 }
 0x136   :  { %1111 = vmatpush3.bf16.msra.mxu1 %v1108_v32 }
 0x137   :  { %1113 = vmatprep.subr.bf16.mxu1 %v1112_v35 }
 0x13a   :  { %1115 = vmatpush3.bf16.msra.mxu1 %v1112_v35  ;;  %v558_v35 = vld [vmem:[#allocation5 + $0x2f0] sm:$0xff] }
 0x13b   :  { %1117 = vmatprep.subr.bf16.mxu1 %v1116_v43 }
 0x13e   :  { %1119 = vmatpush3.bf16.msra.mxu1 %v1116_v43  ;;  %v673_v43 = vld [vmem:[%s1351_s2 + $0x5] ss:$0 sm:$0xff] }
 0x13f   :  { %1153 = vmatprep.subr.bf16.mxu1 %v1152_v12 }
 0x1f4   :  { %v851_v37 = vpop.f32.mrb[0].mxu1 }
 0x1f5   :  { %v234_v38 = vpop.f32.mrb[1].mxu1  ;;  %v240_v40 = vadd.f32 %v851_v37, %v665_v36 }
 0x1f6   :  { %v235_v39 = vadd.f32 %v665_v36, %v234_v38  ;;  %v559_v36 = vld [vmem:[#allocation5 + $0x2f8] sm:$0xff]  ;;  %v671_v38 = vld [vmem:[%s1351_s2 + $0x4] ss:$0 sm:$0xff] }
 0x1f7   :  { %v1180_v37 = vpack.c.bf16 %v559_v36, %v558_v35 }
 0x1f8   :  { %884 = vmatprep.mubr.f32.mxu0 %v235_v39 }
 0x1f9   :  { %885 = vmatmul.mubr.f32.vlgmr.msra.gmra.mrb[2].mxu0 %v240_v40 }
 0x1fa   :  { %1123 = vmatpush3.bf16.msra.mxu0 %v1120_v47 }
 0x1fb   :  { %1125 = vmatprep.subr.bf16.mxu0 %v1124_v49 }
 0x1fe   :  { %1127 = vmatpush3.bf16.msra.mxu0 %v1124_v49 }
 0x1ff   :  { %1129 = vmatprep.subr.bf16.mxu0 %v1128_v52 }
 0x202   :  { %1131 = vmatpush3.bf16.msra.mxu0 %v1128_v52 }
 0x203   :  { %1133 = vmatprep.subr.bf16.mxu0 %v1132_v55 }
 0x206   :  { %1135 = vmatpush3.bf16.msra.mxu0 %v1132_v55 }
 0x207   :  { %1137 = vmatprep.subr.bf16.mxu0 %v1136_v58 }
 0x20a   :  { %1139 = vmatpush3.bf16.msra.mxu0 %v1136_v58 }
 0x20b   :  { %1141 = vmatprep.subr.bf16.mxu0 %v1140_v61 }
 0x20e   :  { %1143 = vmatpush3.bf16.msra.mxu0 %v1140_v61 }
 0x20f   :  { %1145 = vmatprep.subr.bf16.mxu0 %v1144_v0 }
 0x212   :  { %1147 = vmatpush3.bf16.msra.mxu0 %v1144_v0 }
 0x213   :  { %1149 = vmatprep.subr.bf16.mxu0 %v1148_v8 }
 0x216   :  { %1151 = vmatpush3.bf16.msra.mxu0 %v1148_v8 }
 0x2cc   :  { %v886_v2 = vpop.f32.mrb[2].mxu0 }
 0x2cd   :  { %v334_v3 = vpop.f32.mrb[3].mxu0  ;;  %v340_v5 = vadd.f32 %v886_v2, %v667_v1 }
 0x2ce   :  { %v335_v4 = vadd.f32 %v667_v1, %v334_v3 }
 0x2d0   :  { %919 = vmatprep.mubr.f32.mxu1 %v335_v4 }
 0x2d1   :  { %920 = vmatmul.mubr.f32.vlgmr.msra.gmra.mrb[2].mxu1 %v340_v5 }
 0x2d2   :  { %1155 = vmatpush3.bf16.msra.mxu1 %v1152_v12 }
 0x2d3   :  { %1157 = vmatprep.subr.bf16.mxu1 %v1156_v14 }
 0x2d6   :  { %1159 = vmatpush3.bf16.msra.mxu1 %v1156_v14 }
 0x2d7   :  { %1161 = vmatprep.subr.bf16.mxu1 %v1160_v17 }
 0x2da   :  { %1163 = vmatpush3.bf16.msra.mxu1 %v1160_v17 }
 0x2db   :  { %1165 = vmatprep.subr.bf16.mxu1 %v1164_v20 }
 0x2de   :  { %1167 = vmatpush3.bf16.msra.mxu1 %v1164_v20 }
 0x2df   :  { %1169 = vmatprep.subr.bf16.mxu1 %v1168_v23 }
 0x2e2   :  { %1171 = vmatpush3.bf16.msra.mxu1 %v1168_v23 }
 0x2e3   :  { %1173 = vmatprep.subr.bf16.mxu1 %v1172_v26 }
 0x2e6   :  { %1175 = vmatpush3.bf16.msra.mxu1 %v1172_v26 }
 0x2e7   :  { %1177 = vmatprep.subr.bf16.mxu1 %v1176_v29 }
 0x2ea   :  { %1179 = vmatpush3.bf16.msra.mxu1 %v1176_v29 }
 0x2eb   :  { %1181 = vmatprep.subr.bf16.mxu1 %v1180_v37 }
 0x2ee   :  { %1183 = vmatpush3.bf16.msra.mxu1 %v1180_v37 }
 0x3a4   :  { %v921_v31 = vpop.f32.mrb[2].mxu1 }
 0x3a5   :  { %v434_v32 = vpop.f32.mrb[3].mxu1  ;;  %v440_v34 = vadd.f32 %v921_v31, %v669_v30 }
 0x3a6   :  { %v435_v33 = vadd.f32 %v669_v30, %v434_v32 }
 0x3a8   :  { %954 = vmatprep.mubr.f32.mxu0 %v435_v33 }
 0x3a9   :  { %955 = vmatmul.mubr.f32.vlgmr.msra.gmra.mrb[4].mxu0 %v440_v34 }
 0x47c   :  { %v956_v39 = vpop.f32.mrb[4].mxu0 }
 0x47d   :  { %v534_v40 = vpop.f32.mrb[5].mxu0  ;;  %v540_v42 = vadd.f32 %v956_v39, %v671_v38 }
 0x47e   :  { %v535_v41 = vadd.f32 %v671_v38, %v534_v40 }
 0x480   :  { %989 = vmatprep.mubr.f32.mxu1 %v535_v41 }
 0x481   :  { %990 = vmatmul.mubr.f32.vlgmr.msra.gmra.mrb[4].mxu1 %v540_v42 }
 0x554   :  { %v991_v44 = vpop.f32.mrb[4].mxu1 }
 0x555   :  { %v640_v45 = vadd.f32 %v991_v44, %v673_v43  ;;  %v634_v46 = vpop.f32.mrb[5].mxu1 }
 0x556   :  { %v635_v47 = vadd.f32 %v673_v43, %v634_v46 }
 0x557   :  { %644 = vst [vmem:[#allocation7 + $0x8] sm:$0xff] %v640_v45 }
 0x558   :  { %643 = vst [vmem:[#allocation7] sm:$0xff] %v635_v47 }
 0x559   :  { %1244 = shalt.err (!%p1241_p6)
}
 0x55a   :  { %s1245_s2 = scalar_lea.hbm %s1352_s3, 256 }
 0x55b   :  { %p1246_p7 = scmp.ne.s32.totalorder %s1352_s3, %s1245_s2  ;;  %p1249_p8 = scmp.lt.u32.totalorder %s1245_s2, %s1352_s3 }
 0x55d   :  { %p1251_p9 = pnand %p1249_p8, %p1246_p7 }
 0x55f   :  { %1254 = shalt.err (!%p1251_p9)
}
 0x560   :  { %656 = dma.vmem_to_hbm [thread:$0]  %s651_s24, 256, %s1352_s3, [#allocation4], %s1262_s22, %s1262_s22, %s1263_s23  }
 0x561   :  { %1259 = dma.done.wait [#allocation4], 256  }
 0x562   :  { %1260 = vsyncadd [#allocation4], 4294967040 }
 0x563   :  { %660 = vsyncpa [#allocation3], 1 }
 0x564   :  { %661 = vsyncpa [#allocation6], 1 }
 0x565   :  { %662 = vsyncpa [#allocation4], 1 }

</bundles_post_ra>
